<compile_context>
chip_gen: v7x
topology: tpu7x:2x2x1
jax: 0.10.0
libtpu: 0.0.40
codegen_flags: <defaults>
</compile_context>

<pallas_src>
import jax
import jax.numpy as jnp
from jax.experimental import pallas as pl
from jax.experimental.pallas import tpu as pltpu


def _conv1x1_matmul_kernel(x_ref, w_ref, z_ref):
    """One batch tile of the streaming GEMM: z = x @ W (f32 accumulation)."""
    z_ref[...] = jnp.dot(
        x_ref[...], w_ref[...], preferred_element_type=jnp.float32
    ).astype(z_ref.dtype)


def _choose_batch_tile(n_rows, width, x_itemsize, max_rows):
    """Pick the batch-tile row count.

    - rounds to the dtype's sublane pack (8 for f32, 16 for bf16, 32 for 8-bit)
    - budgets the double-buffered x & z tiles plus the f32 matmul temporary
      against a conservative, generation-safe VMEM allowance
    - caps at `max_rows` (default 1024; 512-1024-row tiles already reach
      ~85% of HBM roofline, bigger tiles only add spill/retile risk)
    """
    pack = max(8, 32 // x_itemsize)
    tile_budget = 20 * 1024 * 1024
    per_row = (2 * width * x_itemsize    # x tile, double-buffered
               + 2 * width * x_itemsize  # z tile, double-buffered
               + width * 4)              # f32 matmul result temporary
    tb = tile_budget // max(per_row, 1)
    tb = min(tb, max_rows, n_rows)
    if tb >= n_rows:
        return n_rows
    return max(pack, (tb // pack) * pack)


def conv1x1_plu_forward(x, P, L, S, U, *, max_rows_per_tile=1024):
    """Pallas implementation of Conv1x1PLU.forward. Returns (z, sum_log_det)."""
    B, D = x.shape
    out_dtype = x.dtype
    compute_dtype = jnp.bfloat16 if x.dtype == jnp.bfloat16 else jnp.float32
    f32 = jnp.float32

    # ---- Hoisted one-time W construction (done once, outside the grid). ----
    eye = jnp.eye(D, dtype=f32)
    l_mat = jnp.tril(L.astype(f32), -1) + eye                 # unit lower-tri
    u_mat = jnp.triu(U.astype(f32), 1) + jnp.diag(S.astype(f32))
    m = l_mat @ u_mat
    # P comes from an LU factorization, so it is a permutation matrix:
    # P @ M is a row gather, not a dense D^3 matmul.
    perm = jnp.argmax(P.astype(f32), axis=1)
    w = jnp.take(m, perm, axis=0)                             # W = P @ L @ (U + diag(S))

    # ---- Lane folding: present a 128-wide (lane-dense) GEMM when D divides 128.
    r = 128 // D if (D < 128 and 128 % D == 0) else 1
    if r > 1:
        pad = (-B) % r
        x_in = jnp.pad(x, ((0, pad), (0, 0))) if pad else x
        x_in = x_in.reshape((B + pad) // r, r * D)            # row-major regroup (free)
        w_in = jnp.kron(jnp.eye(r, dtype=f32), w)             # block-diag kron(I_r, W)
    else:
        pad = 0
        x_in = x
        w_in = w
    Bp, Dp = x_in.shape
    w_in = w_in.astype(compute_dtype)

    x_isz = jnp.dtype(x.dtype).itemsize
    w_isz = jnp.dtype(compute_dtype).itemsize
    tb = _choose_batch_tile(Bp, Dp, x_isz, max_rows_per_tile)
    grid = (pl.cdiv(Bp, tb),)

    # Explicit, generation-safe VMEM limit: covers the pipeline footprint with
    # headroom, stays <= 32 MiB (fits v7x's 64 MiB/TC and raises v5e's 16 MiB
    # scoped default when needed).
    pipeline_bytes = (4 * tb * Dp * x_isz    # x + z tiles, double-buffered
                      + Dp * Dp * w_isz      # W, single-buffered
                      + tb * Dp * 4)         # f32 matmul result
    vmem_limit = int(min(32 << 20, max(16 << 20, pipeline_bytes + (6 << 20))))

    bytes_accessed = int(x_in.size) * x_isz + int(w_in.size) * w_isz + Bp * Dp * x_isz

    z = pl.pallas_call(
        _conv1x1_matmul_kernel,
        out_shape=jax.ShapeDtypeStruct((Bp, Dp), out_dtype),
        grid_spec=pltpu.PrefetchScalarGridSpec(
            num_scalar_prefetch=0,
            grid=grid,
            in_specs=[
                pl.BlockSpec((tb, Dp), lambda i: (i, 0)),            # x batch tile
                pl.BlockSpec((Dp, Dp), lambda i: (0, 0),
                             pipeline_mode=pl.Buffered(1)),          # W (resident, 1 buffer)
            ],
            out_specs=pl.BlockSpec((tb, Dp), lambda i: (i, 0)),      # z batch tile
        ),
        compiler_params=pltpu.CompilerParams(
            dimension_semantics=("parallel",),
            vmem_limit_bytes=vmem_limit,
        ),
        cost_estimate=pl.CostEstimate(
            flops=2 * Bp * Dp * Dp,
            transcendentals=0,
            bytes_accessed=bytes_accessed,
        ),
    )(x_in, w_in)

    if r > 1:
        z = z.reshape(Bp * r, D)
        if pad:
            z = z[:B]

    # Scalar log-det depends only on S; computed in the wrapper and broadcast
    # lane-dense so the kernel never emits last-dim-1 masked stores.
    log_det = jnp.sum(jnp.log(jnp.abs(S.astype(f32))))
    sum_log_det = jnp.full((B, 1), log_det, dtype=out_dtype)
    return z, sum_log_det


def _reference_forward(x, P, L, S, U):
    """Pure-JAX reference matching the PyTorch forward."""
    d = x.shape[1]
    l_mat = jnp.tril(L, -1) + jnp.eye(d, dtype=L.dtype)
    u_mat = jnp.triu(U, 1)
    w = P @ l_mat @ (u_mat + jnp.diag(S))
    z = x @ w
    log_det = jnp.sum(jnp.log(jnp.abs(S)))
    return z, log_det * jnp.ones((x.shape[0], 1), x.dtype)


if __name__ == "__main__":
    def make_inputs(key, B, D):
        kx, kl, ku, ks, ksign, kp = jax.random.split(key, 6)
        x = jax.random.normal(kx, (B, D), dtype=jnp.float32)
        # Deterministic "checkpoint" for the PLU parameterization. forward()
        # only consumes tril(L,-1), triu(U,1), diag(S) and a permutation P, so
        # these random factors exercise exactly the same code paths as real LU
        # factors.  Off-diagonals are scaled for a well-conditioned W.
        perm = jax.random.permutation(kp, D)
        P = jnp.eye(D, dtype=jnp.float32)[perm]
        L = 0.1 * jax.random.normal(kl, (D, D), dtype=jnp.float32)
        U = 0.1 * jax.random.normal(ku, (D, D), dtype=jnp.float32)
        S = (jax.random.uniform(ks, (D,), minval=0.5, maxval=1.5,
                                dtype=jnp.float32)
             * jnp.where(jax.random.bernoulli(ksign, 0.5, (D,)), 1.0, -1.0))
        return x, P, L, S, U

    key = jax.random.PRNGKey(0)
    configs = [
        dict(B=64, D=32, max_rows_per_tile=1024),  # lane-folded (r=4), single tile
        dict(B=64, D=32, max_rows_per_tile=8),     # lane-folded, multi-tile grid
        dict(B=30, D=32, max_rows_per_tile=1024),  # lane-folded with batch padding
        dict(B=24, D=48, max_rows_per_tile=1024),  # no folding (128 % 48 != 0)
    ]
    for i, cfg in enumerate(configs):
        key, sub = jax.random.split(key)
        x, P, L, S, U = make_inputs(sub, cfg["B"], cfg["D"])
        z, sld = conv1x1_plu_forward(
            x, P, L, S, U, max_rows_per_tile=cfg["max_rows_per_tile"])
        jax.block_until_ready((z, sld))

        z_ref, sld_ref = _reference_forward(x, P, L, S, U)
        assert z.shape == z_ref.shape and sld.shape == sld_ref.shape, i
        # Moderate tolerance for z: the in-kernel MXU f32 matmul and XLA's
        # default-precision f32 matmul may use different pass counts.
        assert jnp.allclose(z, z_ref, atol=2e-2, rtol=2e-2), \
            (i, float(jnp.max(jnp.abs(z - z_ref))))
        assert jnp.allclose(sld, sld_ref, atol=1e-5, rtol=1e-5), i

    print("KERNEL_OK")
</pallas_src>

<mosaic_0001>
module attributes {stable_mosaic.version = 11 : i64} {
  func.func @_conv1x1_matmul_kernel(%arg0: i32, %arg1: memref<16x128xf32, #tpu.memory_space<vmem>>, %arg2: memref<128x128xf32, #tpu.memory_space<vmem>>, %arg3: memref<16x128xf32, #tpu.memory_space<vmem>>) attributes {dimension_semantics = [#tpu.dimension_semantics<parallel>], iteration_bounds = array<i64: 1>, scalar_prefetch = 0 : i64, scratch_operands = 0 : i64, tpu.core_type = #tpu.core_type<tc>, window_params = [{transform_indices = @transform_0, window_bounds = array<i64: 16, 128>}, {pipeline_mode = #tpu.pipeline_mode<synchronous>, transform_indices = @transform_1, window_bounds = array<i64: 128, 128>}, {transform_indices = @transform_2, window_bounds = array<i64: 16, 128>}]} {
    %c0 = arith.constant 0 : index
    %c0_0 = arith.constant 0 : index
    %0 = vector.load %arg1[%c0, %c0_0] : memref<16x128xf32, #tpu.memory_space<vmem>>, vector<16x128xf32>
    %c0_1 = arith.constant 0 : index
    %c0_2 = arith.constant 0 : index
    %1 = vector.load %arg2[%c0_1, %c0_2] : memref<128x128xf32, #tpu.memory_space<vmem>>, vector<128x128xf32>
    %cst = arith.constant dense<0.000000e+00> : vector<16x128xf32>
    %2 = tpu.matmul %0, %1, %cst {dimension_numbers = #tpu.dot_dimension_numbers<[1], [0], [0], [1], [0, 0, 1, 1], [], []>} : vector<16x128xf32>, vector<128x128xf32>, vector<16x128xf32> -> vector<16x128xf32>
    %c0_3 = arith.constant 0 : index
    %c0_4 = arith.constant 0 : index
    %3 = vector.load %arg3[%c0_3, %c0_4] : memref<16x128xf32, #tpu.memory_space<vmem>>, vector<16x128xf32>
    tpu.vector_store %arg3[%c0_3, %c0_4], %2 {strides = array<i32>} : memref<16x128xf32, #tpu.memory_space<vmem>>, vector<16x128xf32>,
    return
  }
  func.func @transform_0(%arg0: i32) -> (i32, i32) {
    %c0_i32 = arith.constant 0 : i32
    %c0_i32_0 = arith.constant 0 : i32
    return %arg0, %c0_i32 : i32, i32
  }
  func.func @transform_1(%arg0: i32) -> (i32, i32) {
    %c0_i32 = arith.constant 0 : i32
    %c0_i32_0 = arith.constant 0 : i32
    %c0_i32_1 = arith.constant 0 : i32
    return %c0_i32, %c0_i32_0 : i32, i32
  }
  func.func @transform_2(%arg0: i32) -> (i32, i32) {
    %c0_i32 = arith.constant 0 : i32
    %c0_i32_0 = arith.constant 0 : i32
    return %arg0, %c0_i32 : i32, i32
  }
}

</mosaic_0001>

<bundles_post_ra>
// kernel: tpu_custom_call.1
= control target key start
LH: loop header
LB: loop body
LE: loop exit
PB: predicated region body
PF: predicated region fallthrough
CT: control target
= control target key end

     0   :  { %7 = vsyncpa [#allocation3], 0  ;;  %s380_s0 = inlined_call_operand.hbm [shape: f32[16,128], index: 0, kind: input, shape index: {}]   ;;  %s381_s1 = inlined_call_operand.hbm [shape: f32[128,128], index: 1, kind: input, shape index: {}]   ;;  %s382_s2 = inlined_call_operand.hbm [shape: f32[16,128], index: 2, kind: output, shape index: {}]  }
   0x1   :  { %8 = vsyncpa [#allocation6], 0 }
   0x2   :  { %9 = vsyncpa [#allocation4], 0  ;;  %s315_s9 = smov [#allocation2]   ;;  %s243_s13 = scalar_lea.hbm %s380_s0, 256 }
   0x3   :  { %s15_s10 = sshll.u32 %s315_s9, 4  ;;  %p244_p0 = scmp.ne.s32.totalorder %s380_s0, %s243_s13  ;;  %s16_s10 = int_to_ptr.vmem [resolvable:$true] %s15_s10 }
   0x4   :  { %p247_p1 = scmp.lt.u32.totalorder %s243_s13, %s380_s0 }
   0x6   :  { %p249_p2 = pnand %p247_p1, %p244_p0 }
   0x8   :  { %252 = shalt.err (!%p249_p2)
}
   0x9   :  { %s253_s18 = scalar_lea.vmem %s16_s10, 256  ;;  %p258_p4 = scmp.lt.s32.totalorder %s16_s10, %s16_s10 }
   0xa   :  { %p254_p3 = scmp.ne.s32.totalorder %s16_s10, %s253_s18  ;;  %p259_p5 = scmp.lt.s32.totalorder %s253_s18, %s253_s18 }
   0xc   :  { %p260_p6 = por %p259_p5, %p258_p4 }
   0xe   :  { %p261_p7 = pnand %p260_p6, %p254_p3 }
  0x10   :  { %264 = shalt.err (!%p261_p7)
}
  0x11   :  { %s316_s19 = smov 128   ;;  %s317_s20 = smov 8  }
  0x12   :  { %21 = dma.hbm_to_vmem [thread:$0]  %s380_s0, 256, %s16_s10, [#allocation3], %s316_s19, %s316_s19, %s317_s20  }
  0x13   :  { %s318_s23 = smov [#allocation5]   ;;  %s265_s27 = scalar_lea.hbm %s381_s1, 2048 }
  0x14   :  { %s27_s24 = sshll.u32 %s318_s23, 4  ;;  %p266_p8 = scmp.ne.s32.totalorder %s381_s1, %s265_s27  ;;  %s28_s24 = int_to_ptr.vmem [resolvable:$true] %s27_s24 }
  0x15   :  { %p269_p9 = scmp.lt.u32.totalorder %s265_s27, %s381_s1 }
  0x17   :  { %p271_p10 = pnand %p269_p9, %p266_p8 }
  0x19   :  { %274 = shalt.err (!%p271_p10)
}
  0x1a   :  { %s275_s4 = scalar_lea.vmem %s28_s24, 2048  ;;  %p280_p12 = scmp.lt.s32.totalorder %s28_s24, %s28_s24 }
  0x1b   :  { %p276_p11 = scmp.ne.s32.totalorder %s28_s24, %s275_s4  ;;  %p281_p13 = scmp.lt.s32.totalorder %s275_s4, %s275_s4 }
  0x1d   :  { %p282_p0 = por %p281_p13, %p280_p12 }
  0x1f   :  { %p283_p1 = pnand %p282_p0, %p276_p11 }
  0x21   :  { %286 = shalt.err (!%p283_p1)
}
  0x22   :  { %33 = dma.hbm_to_vmem [thread:$0]  %s381_s1, 2048, %s28_s24, [#allocation6], %s316_s19, %s316_s19, %s317_s20  }
  0x23   :  { %309 = dma.done.wait [#allocation3], 256  }
  0x24   :  { %310 = vsyncadd [#allocation3], 4294967040 }
  0x25   :  { %311 = dma.done.wait [#allocation6], 2048  }
  0x26   :  { %312 = vsyncadd [#allocation6], 4294965248  ;;  %v42_v0 = vld [vmem:[#allocation5] sm:$0xff]  ;;  %v43_v1 = vld [vmem:[#allocation5 + $0x8] sm:$0xff]  ;;  %s319_s1 = smov [#allocation7]  }
  0x27   :  { %v44_v2 = vld [vmem:[#allocation5 + $0x10] sm:$0xff]  ;;  %v206_v3 = vpack.c.bf16 %v43_v1, %v42_v0  ;;  %v45_v4 = vld [vmem:[#allocation5 + $0x18] sm:$0xff]  ;;  %v46_v6 = vld [vmem:[#allocation5 + $0x20] sm:$0xff]  ;;  %s140_s6 = sshll.u32 %s319_s1, 4  ;;  %s141_s6 = int_to_ptr.vmem [resolvable:$true] %s140_s6 }
  0x28   :  { %v210_v5 = vpack.c.bf16 %v45_v4, %v44_v2  ;;  %v47_v7 = vld [vmem:[#allocation5 + $0x28] sm:$0xff]  ;;  %v40_v9 = vld [vmem:[#allocation2] sm:$0xff]  ;;  %v49_v11 = vld [vmem:[#allocation5 + $0x38] sm:$0xff]  ;;  %s287_s7 = scalar_lea.vmem %s141_s6, 256  ;;  %p292_p3 = scmp.lt.s32.totalorder %s141_s6, %s141_s6 }
  0x29   :  { %207 = vmatprep.subr.bf16.mxu0 %v206_v3  ;;  %v214_v8 = vpack.c.bf16 %v47_v7, %v46_v6  ;;  %v48_v10 = vld [vmem:[#allocation5 + $0x30] sm:$0xff]  ;;  %203 = vmatprep.mubr.f32.mxu0 %v40_v9  ;;  %v50_v13 = vld [vmem:[#allocation5 + $0x40] sm:$0xff]  ;;  %v51_v14 = vld [vmem:[#allocation5 + $0x48] sm:$0xff]  ;;  %p288_p2 = scmp.ne.s32.totalorder %s141_s6, %s287_s7  ;;  %p293_p4 = scmp.lt.s32.totalorder %s287_s7, %s287_s7 }
  0x2a   :  { %209 = vmatpush3.bf16.msra.mxu0 %v206_v3  ;;  %v218_v12 = vpack.c.bf16 %v49_v11, %v48_v10  ;;  %v222_v15 = vpack.c.bf16 %v51_v14, %v50_v13  ;;  %v52_v16 = vld [vmem:[#allocation5 + $0x50] sm:$0xff]  ;;  %v53_v17 = vld [vmem:[#allocation5 + $0x58] sm:$0xff]  ;;  %v54_v19 = vld [vmem:[#allocation5 + $0x60] sm:$0xff] }
  0x2b   :  { %211 = vmatprep.subr.bf16.mxu0 %v210_v5  ;;  %v226_v18 = vpack.c.bf16 %v53_v17, %v52_v16  ;;  %v55_v20 = vld [vmem:[#allocation5 + $0x68] sm:$0xff]  ;;  %v56_v22 = vld [vmem:[#allocation5 + $0x70] sm:$0xff]  ;;  %v57_v23 = vld [vmem:[#allocation5 + $0x78] sm:$0xff]  ;;  %p294_p5 = por %p293_p4, %p292_p3 }
  0x2c   :  { %v230_v21 = vpack.c.bf16 %v55_v20, %v54_v19  ;;  %v234_v24 = vpack.c.bf16 %v57_v23, %v56_v22  ;;  %v41_v25 = vld [vmem:[#allocation2 + $0x8] sm:$0xff] }
  0x2d   :  { %p295_p6 = pnand %p294_p5, %p288_p2 }
  0x2e   :  { %213 = vmatpush3.bf16.msra.mxu0 %v210_v5 }
  0x2f   :  { %215 = vmatprep.subr.bf16.mxu0 %v214_v8 }
  0x32   :  { %217 = vmatpush3.bf16.msra.mxu0 %v214_v8 }
  0x33   :  { %219 = vmatprep.subr.bf16.mxu0 %v218_v12 }
  0x36   :  { %221 = vmatpush3.bf16.msra.mxu0 %v218_v12 }
  0x37   :  { %223 = vmatprep.subr.bf16.mxu0 %v222_v15 }
  0x3a   :  { %225 = vmatpush3.bf16.msra.mxu0 %v222_v15 }
  0x3b   :  { %227 = vmatprep.subr.bf16.mxu0 %v226_v18 }
  0x3e   :  { %229 = vmatpush3.bf16.msra.mxu0 %v226_v18 }
  0x3f   :  { %231 = vmatprep.subr.bf16.mxu0 %v230_v21 }
  0x42   :  { %233 = vmatpush3.bf16.msra.mxu0 %v230_v21 }
  0x43   :  { %235 = vmatprep.subr.bf16.mxu0 %v234_v24 }
  0x46   :  { %237 = vmatpush3.bf16.msra.mxu0 %v234_v24 }
  0x49   :  { %204 = vmatmul.mubr.f32.vlgmr.msra.gmra.mrb[0].mxu0 %v41_v25 }
 0x11c   :  { %v205_v26 = vpop.f32.mrb[0].mxu0 }
 0x11d   :  { %134 = vst [vmem:[#allocation7 + $0x8] sm:$0xff] %v205_v26  ;;  %v124_v27 = vpop.f32.mrb[1].mxu0 }
 0x11e   :  { %133 = vst [vmem:[#allocation7] sm:$0xff] %v124_v27 }
 0x11f   :  { %298 = shalt.err (!%p295_p6)
}
 0x120   :  { %s299_s10 = scalar_lea.hbm %s382_s2, 256 }
 0x121   :  { %p300_p7 = scmp.ne.s32.totalorder %s382_s2, %s299_s10  ;;  %p303_p8 = scmp.lt.u32.totalorder %s299_s10, %s382_s2 }
 0x123   :  { %p305_p9 = pnand %p303_p8, %p300_p7 }
 0x125   :  { %308 = shalt.err (!%p305_p9)
}
 0x126   :  { %146 = dma.vmem_to_hbm [thread:$0]  %s141_s6, 256, %s382_s2, [#allocation4], %s316_s19, %s316_s19, %s317_s20  }
 0x127   :  { %313 = dma.done.wait [#allocation4], 256  }
 0x128   :  { %314 = vsyncadd [#allocation4], 4294967040 }
 0x129   :  { %150 = vsyncpa [#allocation3], 1 }
 0x12a   :  { %151 = vsyncpa [#allocation6], 1 }
 0x12b   :  { %152 = vsyncpa [#allocation4], 1 }

</bundles_post_ra>
